<compile_context>
chip_gen: v5e
topology: v5e:2x2
jax: 0.10.0
libtpu: 0.0.40
codegen_flags: <defaults>
</compile_context>

<pallas_src>
import jax
import jax.numpy as jnp
from jax.experimental import pallas as pl
from jax.experimental.pallas import tpu as pltpu


def affine_coupling_kernel(x_ref, ldj_ref, w1_ref, b1_ref, w2_ref, b2_ref,
                           y_ref, logdet_ref):
    D = x_ref.shape[-1]
    x = x_ref[...].astype(jnp.float32)                       # (TB, D)

    # Fused Linear -> ReLU for both scale and shift nets:  (TB, 2*mid)
    h = jnp.maximum(
        jnp.dot(x, w1_ref[...], preferred_element_type=jnp.float32)
        + b1_ref[...], 0.0)

    # Fused second Linear (block-diagonal, spread to interleaved lane
    # positions) -> Tanh:  (TB, 2*D);  columns of the untouched half are 0.
    st = jnp.tanh(
        jnp.dot(h, w2_ref[...], preferred_element_type=jnp.float32)
        + b2_ref[...])

    s_pre = st[:, :D]                                        # log-scale (0 on kept lanes)
    shift = st[:, D:]                                        # shift     (0 on kept lanes)

    # Affine coupling over the full lane-dense tile:
    #   kept lanes: x * exp(0) + 0 = x ; transformed lanes: x2*scale + shift.
    y_ref[...] = (x * jnp.exp(s_pre) + shift).astype(y_ref.dtype)

    # log-det: sum of log-scale == sum of pre-exp values (no log(exp(.)) pair),
    # with the running log_det_J folded in.
    logdet_ref[...] = ldj_ref[...] + jnp.sum(s_pre, axis=1, keepdims=True)


def pack_params(params, in_out_dim, mask_config):
    """Fold de-interleave / re-interleave and the scale|shift fusion into the
    weights.  Done once per parameter set (outside the kernel)."""
    ws1, bs1, ws2, bs2, wt1, bt1, wt2, bt2 = params
    D = in_out_dim
    half = D // 2
    mid = ws1.shape[1]

    cols_x1 = mask_config + 2 * jnp.arange(half)       # lanes of the kept half
    cols_x2 = (1 - mask_config) + 2 * jnp.arange(half)  # lanes of the transformed half

    # First layer: (D, 2*mid) = rows at x1 lanes hold [ws1 | wt1], rest zero.
    w1 = jnp.zeros((D, 2 * mid), jnp.float32)
    w1 = w1.at[cols_x1, :mid].set(ws1)
    w1 = w1.at[cols_x1, mid:].set(wt1)
    b1 = jnp.concatenate([bs1, bt1], axis=1)           # (1, 2*mid)

    # Second layer: block-diagonal (2*mid, 2*D); columns spread to x2 lanes.
    #   out[:, :D]  -> scale pre-activation (on x2 lanes, 0 elsewhere)
    #   out[:, D:]  -> shift pre-activation (on x2 lanes, 0 elsewhere)
    w2 = jnp.zeros((2 * mid, 2 * D), jnp.float32)
    w2 = w2.at[:mid, cols_x2].set(ws2)
    w2 = w2.at[mid:, D + cols_x2].set(wt2)
    b2 = jnp.zeros((1, 2 * D), jnp.float32)
    b2 = b2.at[0, cols_x2].set(bs2[0])
    b2 = b2.at[0, D + cols_x2].set(bt2[0])
    return w1, b1, w2, b2


def affine_coupling_forward(x, log_det_J, params, mask_config, block_b=None):
    """Mirrors AffineCoupling.forward(x, log_det_J, reverse=False)."""
    B, D = x.shape
    w1, b1, w2, b2 = pack_params(params, D, mask_config)
    mid2 = w1.shape[1]

    if block_b is None:
        # Largest sublane-aligned batch tile (<=256) that divides B; weights
        # are tiny so VMEM (64 MiB on v7x) is never the limiter at these sizes.
        block_b = B
        for tb in (256, 128, 64, 32, 16, 8):
            if B % tb == 0:
                block_b = tb
                break
    grid = (B // block_b,)

    ldj2 = log_det_J.reshape(B, 1).astype(jnp.float32)

    y, logdet = pl.pallas_call(
        affine_coupling_kernel,
        grid=grid,
        in_specs=[
            pl.BlockSpec((block_b, D), lambda i: (i, 0)),   # x (batch-tiled)
            pl.BlockSpec((block_b, 1), lambda i: (i, 0)),   # log_det_J
            pl.BlockSpec((D, mid2), lambda i: (0, 0)),      # W1 (resident)
            pl.BlockSpec((1, mid2), lambda i: (0, 0)),      # b1
            pl.BlockSpec((mid2, 2 * D), lambda i: (0, 0)),  # W2 (resident)
            pl.BlockSpec((1, 2 * D), lambda i: (0, 0)),     # b2
        ],
        out_specs=[
            pl.BlockSpec((block_b, D), lambda i: (i, 0)),   # interleaved y
            pl.BlockSpec((block_b, 1), lambda i: (i, 0)),   # updated log-det
        ],
        out_shape=[
            jax.ShapeDtypeStruct((B, D), x.dtype),
            jax.ShapeDtypeStruct((B, 1), jnp.float32),
        ],
        compiler_params=pltpu.CompilerParams(
            dimension_semantics=("parallel",)),
    )(x, ldj2, w1, b1, w2, b2)

    return y, logdet[:, 0]


def _init_linear(key, fan_in, fan_out):
    """PyTorch-style nn.Linear init, weight stored as (in, out)."""
    kw, kb = jax.random.split(key)
    bound = 1.0 / jnp.sqrt(fan_in)
    w = jax.random.uniform(kw, (fan_in, fan_out), jnp.float32, -bound, bound)
    b = jax.random.uniform(kb, (1, fan_out), jnp.float32, -bound, bound)
    return w, b


def _reference(x, log_det_J, params, mask_config):
    """Pure-JAX reference matching the PyTorch forward (reverse=False)."""
    ws1, bs1, ws2, bs2, wt1, bt1, wt2, bt2 = params
    B, D = x.shape
    half = D // 2
    xr = x.reshape(B, half, 2)
    x1 = xr[:, :, mask_config]
    x2 = xr[:, :, 1 - mask_config]
    scale = jnp.exp(jnp.tanh(jnp.maximum(x1 @ ws1 + bs1, 0.0) @ ws2 + bs2))
    shift = jnp.tanh(jnp.maximum(x1 @ wt1 + bt1, 0.0) @ wt2 + bt2)
    y2 = x2 * scale + shift
    ordered = [x1, y2] if mask_config == 0 else [y2, x1]
    y = jnp.stack(ordered, axis=2).reshape(B, D)
    return y, log_det_J + jnp.sum(jnp.log(scale), axis=1)


if __name__ == "__main__":
    # Module config: in_out_dim=16, mid_dim=32, hidden=2, mask_config=1
    B, in_out_dim, mid_dim, hidden, mask_config = 64, 16, 32, 2, 1
    half = in_out_dim // 2

    key = jax.random.PRNGKey(0)
    k_x, k_ld, k_s1, k_s2, k_t1, k_t2 = jax.random.split(key, 6)

    x = jax.random.normal(k_x, (B, in_out_dim), jnp.float32)
    log_det_J = jax.random.normal(k_ld, (B,), jnp.float32)

    # hidden=2 => each net is Linear(half, mid)+ReLU, Linear(mid, half)+Tanh
    ws1, bs1 = _init_linear(k_s1, half, mid_dim)
    ws2, bs2 = _init_linear(k_s2, mid_dim, half)
    wt1, bt1 = _init_linear(k_t1, half, mid_dim)
    wt2, bt2 = _init_linear(k_t2, mid_dim, half)
    params = (ws1, bs1, ws2, bs2, wt1, bt1, wt2, bt2)

    # block_b=32 -> grid=(2,) to exercise the batch-tiled, parallel grid path.
    y, ld = affine_coupling_forward(x, log_det_J, params, mask_config,
                                    block_b=32)
    jax.block_until_ready((y, ld))

    y_ref, ld_ref = _reference(x, log_det_J, params, mask_config)
    assert jnp.allclose(y, y_ref, atol=1e-4, rtol=1e-4)
    assert jnp.allclose(ld, ld_ref, atol=1e-4, rtol=1e-4)

    print("KERNEL_OK")
</pallas_src>

<mosaic_0001>
module attributes {stable_mosaic.version = 11 : i64} {
  func.func @affine_coupling_kernel(%arg0: i32, %arg1: memref<32x16xf32, #tpu.memory_space<vmem>>, %arg2: memref<32x1xf32, #tpu.memory_space<vmem>>, %arg3: memref<16x64xf32, #tpu.memory_space<vmem>>, %arg4: memref<1x64xf32, #tpu.memory_space<vmem>>, %arg5: memref<64x32xf32, #tpu.memory_space<vmem>>, %arg6: memref<1x32xf32, #tpu.memory_space<vmem>>, %arg7: memref<32x16xf32, #tpu.memory_space<vmem>>, %arg8: memref<32x1xf32, #tpu.memory_space<vmem>>) attributes {dimension_semantics = [#tpu.dimension_semantics<parallel>], iteration_bounds = array<i64: 2>, scalar_prefetch = 0 : i64, scratch_operands = 0 : i64, tpu.core_type = #tpu.core_type<tc>, window_params = [{transform_indices = @transform_0, window_bounds = array<i64: 32, 16>}, {transform_indices = @transform_1, window_bounds = array<i64: 32, 1>}, {pipeline_mode = #tpu.pipeline_mode<synchronous>, transform_indices = @transform_2, window_bounds = array<i64: 16, 64>}, {pipeline_mode = #tpu.pipeline_mode<synchronous>, transform_indices = @transform_3, window_bounds = array<i64: 1, 64>}, {pipeline_mode = #tpu.pipeline_mode<synchronous>, transform_indices = @transform_4, window_bounds = array<i64: 64, 32>}, {pipeline_mode = #tpu.pipeline_mode<synchronous>, transform_indices = @transform_5, window_bounds = array<i64: 1, 32>}, {transform_indices = @transform_6, window_bounds = array<i64: 32, 16>}, {transform_indices = @transform_7, window_bounds = array<i64: 32, 1>}]} {
    %c0 = arith.constant 0 : index
    %c0_0 = arith.constant 0 : index
    %0 = vector.load %arg1[%c0, %c0_0] : memref<32x16xf32, #tpu.memory_space<vmem>>, vector<32x16xf32>
    %c0_1 = arith.constant 0 : index
    %c0_2 = arith.constant 0 : index
    %1 = vector.load %arg3[%c0_1, %c0_2] : memref<16x64xf32, #tpu.memory_space<vmem>>, vector<16x64xf32>
    %cst = arith.constant dense<0.000000e+00> : vector<32x64xf32>
    %2 = tpu.matmul %0, %1, %cst {dimension_numbers = #tpu.dot_dimension_numbers<[1], [0], [0], [1], [0, 0, 1, 1], [], []>} : vector<32x16xf32>, vector<16x64xf32>, vector<32x64xf32> -> vector<32x64xf32>
    %c0_3 = arith.constant 0 : index
    %c0_4 = arith.constant 0 : index
    %3 = vector.load %arg4[%c0_3, %c0_4] : memref<1x64xf32, #tpu.memory_space<vmem>>, vector<1x64xf32>
    %4 = vector.broadcast %3 : vector<1x64xf32> to vector<32x64xf32>
    %5 = arith.addf %2, %4 : vector<32x64xf32>
    %cst_5 = arith.constant 0.000000e+00 : f32
    %6 = vector.broadcast %cst_5 : f32 to vector<32x64xf32>
    %7 = arith.maximumf %5, %6 : vector<32x64xf32>
    %c0_6 = arith.constant 0 : index
    %c0_7 = arith.constant 0 : index
    %8 = vector.load %arg5[%c0_6, %c0_7] : memref<64x32xf32, #tpu.memory_space<vmem>>, vector<64x32xf32>
    %cst_8 = arith.constant dense<0.000000e+00> : vector<32x32xf32>
    %9 = tpu.matmul %7, %8, %cst_8 {dimension_numbers = #tpu.dot_dimension_numbers<[1], [0], [0], [1], [0, 0, 1, 1], [], []>} : vector<32x64xf32>, vector<64x32xf32>, vector<32x32xf32> -> vector<32x32xf32>
    %c0_9 = arith.constant 0 : index
    %c0_10 = arith.constant 0 : index
    %10 = vector.load %arg6[%c0_9, %c0_10] : memref<1x32xf32, #tpu.memory_space<vmem>>, vector<1x32xf32>
    %11 = vector.broadcast %10 : vector<1x32xf32> to vector<32x32xf32>
    %12 = arith.addf %9, %11 : vector<32x32xf32>
    %13 = math.tanh %12 : vector<32x32xf32>
    %14 = vector.extract_strided_slice %13 {offsets = [0, 0], sizes = [32, 16], strides = [1, 1]} : vector<32x32xf32> to vector<32x16xf32>
    %15 = vector.extract_strided_slice %13 {offsets = [0, 16], sizes = [32, 16], strides = [1, 1]} : vector<32x32xf32> to vector<32x16xf32>
    %16 = math.exp %14 : vector<32x16xf32>
    %17 = arith.mulf %0, %16 : vector<32x16xf32>
    %18 = arith.addf %17, %15 : vector<32x16xf32>
    %c0_11 = arith.constant 0 : index
    %c0_12 = arith.constant 0 : index
    %19 = vector.load %arg7[%c0_11, %c0_12] : memref<32x16xf32, #tpu.memory_space<vmem>>, vector<32x16xf32>
    tpu.vector_store %arg7[%c0_11, %c0_12], %18 {strides = array<i32>} : memref<32x16xf32, #tpu.memory_space<vmem>>, vector<32x16xf32>,
    %c0_13 = arith.constant 0 : index
    %c0_14 = arith.constant 0 : index
    %20 = vector.load %arg2[%c0_13, %c0_14] : memref<32x1xf32, #tpu.memory_space<vmem>>, vector<32x1xf32>
    %cst_15 = arith.constant dense<0.000000e+00> : vector<32xf32>
    %21 = vector.multi_reduction <add>, %14, %cst_15 [1] : vector<32x16xf32> to vector<32xf32>
    %22 = vector.shape_cast %21 : vector<32xf32> to vector<32x1xf32>
    %23 = arith.addf %20, %22 : vector<32x1xf32>
    %c0_16 = arith.constant 0 : index
    %c0_17 = arith.constant 0 : index
    %24 = vector.load %arg8[%c0_16, %c0_17] : memref<32x1xf32, #tpu.memory_space<vmem>>, vector<32x1xf32>
    tpu.vector_store %arg8[%c0_16, %c0_17], %23 {strides = array<i32>} : memref<32x1xf32, #tpu.memory_space<vmem>>, vector<32x1xf32>,
    return
  }
  func.func @transform_0(%arg0: i32) -> (i32, i32) {
    %c0_i32 = arith.constant 0 : i32
    %c0_i32_0 = arith.constant 0 : i32
    return %arg0, %c0_i32 : i32, i32
  }
  func.func @transform_1(%arg0: i32) -> (i32, i32) {
    %c0_i32 = arith.constant 0 : i32
    %c0_i32_0 = arith.constant 0 : i32
    return %arg0, %c0_i32 : i32, i32
  }
  func.func @transform_2(%arg0: i32) -> (i32, i32) {
    %c0_i32 = arith.constant 0 : i32
    %c0_i32_0 = arith.constant 0 : i32
    %c0_i32_1 = arith.constant 0 : i32
    return %c0_i32, %c0_i32_0 : i32, i32
  }
  func.func @transform_3(%arg0: i32) -> (i32, i32) {
    %c0_i32 = arith.constant 0 : i32
    %c0_i32_0 = arith.constant 0 : i32
    %c0_i32_1 = arith.constant 0 : i32
    return %c0_i32, %c0_i32_0 : i32, i32
  }
  func.func @transform_4(%arg0: i32) -> (i32, i32) {
    %c0_i32 = arith.constant 0 : i32
    %c0_i32_0 = arith.constant 0 : i32
    %c0_i32_1 = arith.constant 0 : i32
    return %c0_i32, %c0_i32_0 : i32, i32
  }
  func.func @transform_5(%arg0: i32) -> (i32, i32) {
    %c0_i32 = arith.constant 0 : i32
    %c0_i32_0 = arith.constant 0 : i32
    %c0_i32_1 = arith.constant 0 : i32
    return %c0_i32, %c0_i32_0 : i32, i32
  }
  func.func @transform_6(%arg0: i32) -> (i32, i32) {
    %c0_i32 = arith.constant 0 : i32
    %c0_i32_0 = arith.constant 0 : i32
    return %arg0, %c0_i32 : i32, i32
  }
  func.func @transform_7(%arg0: i32) -> (i32, i32) {
    %c0_i32 = arith.constant 0 : i32
    %c0_i32_0 = arith.constant 0 : i32
    return %arg0, %c0_i32 : i32, i32
  }
}

</mosaic_0001>

<bundles_post_ra>
// kernel: tpu_custom_call.1
= control target key start
LH: loop header
LB: loop body
LE: loop exit
PB: predicated region body
PF: predicated region fallthrough
CT: control target
= control target key end

     0   :  { %s712_s24 = smov 0   ;;  %s815_s0 = inlined_call_operand.vmem [shape: f32[64,16], index: 0, kind: input, shape index: {}]   ;;  %s816_s1 = inlined_call_operand.vmem [shape: f32[64,1], index: 1, kind: input, shape index: {}]   ;;  %s817_s2 = inlined_call_operand.vmem [shape: f32[16,64], index: 2, kind: input, shape index: {}]   ;;  %s818_s3 = inlined_call_operand.vmem [shape: f32[1,64], index: 3, kind: input, shape index: {}]   ;;  %s819_s4 = inlined_call_operand.vmem [shape: f32[64,32], index: 4, kind: input, shape index: {}]   ;;  %s820_s5 = inlined_call_operand.vmem [shape: f32[1,32], index: 5, kind: input, shape index: {}]   ;;  %s821_s6 = inlined_call_operand.vmem [shape: f32[64,16], index: 6, kind: output, shape index: {0}]   ;;  %s822_s7 = inlined_call_operand.vmem [shape: f32[64,1], index: 7, kind: output, shape index: {1}]  }
   0x1 LB: > { %s595_s25 = sadd.s32 4294967295, %s669_s24   ;;  %p599_p0 = scmp.ge.s32.totalorder %s669_s24, 1  ;;  %s669_s24 = sphi %s712_s24, %s18_s24  }
   0x2   : > { %p252_p1 = scmp.lt.s32.totalorder %s669_s24, 3 }
   0x4   : > { %p253_p2 = pnand %p599_p0, %p252_p1 }
   0x5   : > { %s600_s30 = sshll.u32 (!%p253_p2), %s595_s25, 2  ;;  %s671_s10 = smov (!%p253_p2), 112  }
   0x6   : > { %256 = sbr.rel (%p253_p2) target bundleno = 469 (0x1d5), region = 44  ;;  %p295_p3 = scmp.lt.s32.totalorder (!%p253_p2), %s600_s30, 7 }
   0xb   : > { %v323_v0 = vld [vmem:[%s817_s2 + $0x8] sm:$0xff]  ;;  %v322_v1 = vld [vmem:[%s817_s2] sm:$0xff]  ;;  %v381_v2 = vld [vmem:[%s819_s4 + $0x38] sm:$0xff]  ;;  %s824_s30 = smov (!%p295_p3, %s600_s30), 7  ;;  %vm328_vm0 = vcmask 130048   ;;  %vm386_vm1 = vcmask 523264  }
   0xc   : > { %355 = vmatpush.msra.mxu0 %v323_v0  ;;  %618 = vmatpush.msra.mxu3 %v323_v0  ;;  %v380_v3 = vld [vmem:[%s819_s4 + $0x30] sm:$0xff]  ;;  %s732_s12 = sshll.u32 %s824_s30, 3  ;;  %v379_v4 = vld [vmem:[%s819_s4 + $0x28] sm:$0xff]  ;;  %v378_v7 = vld [vmem:[%s819_s4 + $0x20] sm:$0xff]  ;;  %vm488_vm2 = vcmask 7168  }
   0xd   : > { %620 = vmatpush.msra.mxu1 %v381_v2  ;;  %621 = vmatpush.msra.mxu2 %v381_v2  ;;  %s298_s17 = scalar_lea.vmem %s815_s0, %s732_s12  ;;  %v377_v8 = vld [vmem:[%s819_s4 + $0x18] sm:$0xff]  ;;  %v376_v11 = vld [vmem:[%s819_s4 + $0x10] sm:$0xff]  ;;  %v375_v12 = vld [vmem:[%s819_s4 + $0x8] sm:$0xff]  ;;  %s787_s14 = scalar_lea.vmem %s821_s6, %s732_s12 }
   0xe   : > { %356 = vmatpush.msra.mxu0 %v322_v1  ;;  %619 = vmatpush.msra.mxu3 %v322_v1  ;;  %v741_v5 = vld [vmem:[%s298_s17] sm:$0xff]  ;;  %v743_v6 = vld [vmem:[%s298_s17 + $0x8] sm:$0xff]  ;;  %v755_v9 = vld [vmem:[%s298_s17 + $0x10] sm:$0xff]  ;;  %s316_s20 = scalar_lea.vmem %s822_s7, %s732_s12 }
   0xf   : > { %622 = vmatpush.msra.mxu1 %v380_v3  ;;  %623 = vmatpush.msra.mxu2 %v380_v3  ;;  %v759_v10 = vld [vmem:[%s298_s17 + $0x18] sm:$0xff]  ;;  %v374_v13 = vld [vmem:[%s819_s4] sm:$0xff]  ;;  %s304_s17 = scalar_lea.vmem %s816_s1, %s732_s12 }
  0x10   : > { %407 = vmatpush.msrb.mxu0 %v381_v2  ;;  %609 = vmatmul.msk.f32.vlgmr.msra.gmra.mxu3 %vm328_vm0, %v743_v6  ;;  %v645_v14 = vld [vmem:[%s818_s3] ss:$0 sm:$0xff]  ;;  %v469_v61 = vld [vmem:[%s304_s17 + $0x8] sm:$0xff]  ;;  %v471_v2 = vld [vmem:[%s304_s17 + $0x18] sm:$0xff] }
  0x11   : > { %624 = vmatpush.msra.mxu1 %v379_v4  ;;  %625 = vmatpush.msra.mxu2 %v379_v4  ;;  %v646_v27 = vld [vmem:[%s820_s5] ss:$0 sm:$0xff] }
  0x12   : > { %408 = vmatpush.msrb.mxu0 %v380_v3  ;;  %v468_v60 = vld [vmem:[%s304_s17] sm:$0xff] }
  0x13   : > { %608 = vmatmul.msk.f32.vlgmr.msra.gmra.mxu0 %vm328_vm0, %v741_v5  ;;  %626 = vmatpush.msra.mxu1 %v378_v7 }
  0x14   : > { %409 = vmatpush.msrb.mxu0 %v379_v4  ;;  %627 = vmatpush.msra.mxu2 %v378_v7  ;;  %v470_v4 = vld [vmem:[%s304_s17 + $0x10] sm:$0xff] }
  0x15   : > { %628 = vmatpush.msra.mxu1 %v377_v8 }
  0x16   : > { %410 = vmatpush.msrb.mxu0 %v378_v7  ;;  %629 = vmatpush.msra.mxu2 %v377_v8 }
  0x17   : > { %630 = vmatpush.msra.mxu1 %v376_v11 }
  0x18   : > { %411 = vmatpush.msrb.mxu0 %v377_v8  ;;  %610 = vmatmul.msk.f32.gmra.mxu3 %vm328_vm0, %v755_v9 }
  0x19   : > { %631 = vmatpush.msra.mxu2 %v376_v11  ;;  %632 = vmatpush.msra.mxu1 %v375_v12 }
  0x1a   : > { %412 = vmatpush.msrb.mxu0 %v376_v11 }
  0x1b   : > { %633 = vmatpush.msra.mxu2 %v375_v12  ;;  %634 = vmatpush.msra.mxu1 %v374_v13 }
  0x1c   : > { %413 = vmatpush.msrb.mxu0 %v375_v12 }
  0x1d   : > { %635 = vmatpush.msra.mxu2 %v374_v13 }
  0x1e   : > { %414 = vmatpush.msrb.mxu0 %v374_v13 }
  0x20   : > { %611 = vmatmul.msk.f32.gmra.mxu3 %vm328_vm0, %v759_v10 }
  0x90   : > { %v358_v15 = vpop.f32.mrf.mxu0 }
  0x91   : > { %v359_v16 = vadd.f32 %v645_v14, %v358_v15 }
  0x93   : > { %v370_v17 = vmax.f32 %v359_v16, 0.0  ;;  %v361_v18 = vpop.f32.mrf.mxu3 }
  0x94   : > { %v362_v19 = vadd.f32 %v645_v14, %v361_v18 }
  0x95   : > { %612 = vmatmul.msk.f32.vlgmr.msrb.gmra.mxu0 %vm386_vm1, %v370_v17 }
  0x96   : > { %v371_v20 = vmax.f32 %v362_v19, 0.0 }
  0x98   : > { %613 = vmatmul.msk.f32.vlgmr.msra.gmra.mxu1 %vm386_vm1, %v371_v20 }
  0x9b   : > { %v364_v21 = vpop.f32.mrf.mxu3 }
  0x9c   : > { %v365_v22 = vadd.f32 %v645_v14, %v364_v21 }
  0x9e   : > { %v372_v23 = vmax.f32 %v365_v22, 0.0 }
  0xa0   : > { %614 = vmatmul.msk.f32.vlgmr.msra.gmra.mxu2 %vm386_vm1, %v372_v23 }
  0xa3   : > { %v367_v24 = vpop.f32.mrf.mxu3 }
  0xa4   : > { %v368_v25 = vadd.f32 %v645_v14, %v367_v24 }
  0xa6   : > { %v373_v26 = vmax.f32 %v368_v25, 0.0 }
  0xa8   : > { %615 = vmatmul.msk.f32.gmra.mxu2 %vm386_vm1, %v373_v26 }
 0x112   : > { %v416_v28 = vpop.f32.mrf.mxu0 }
 0x113   : > { %v417_v29 = vadd.f32 %v646_v27, %v416_v28 }
 0x115   : > { %647 = vtanh.f32 %v417_v29  ;;  %v419_v30 = vpop.f32.mrf.mxu1 }
 0x116   : > { %v420_v31 = vadd.f32 %v646_v27, %v419_v30 }
 0x118   : > { %649 = vtanh.f32 %v420_v31 }
 0x11b   : > { %v648_v32 = vpop.eup %647 }
 0x11c   : > { %448 = vrot.lane.b32.xlu0 %v648_v32, %s671_s10  ;;  %v472_v40 = vsel %vm328_vm0, %v648_v32, 0.0  ;;  %v432_v44 = vmul.f32 1.442695, %v648_v32 }
 0x11e   : > { %v650_v33 = vpop.eup %649 }
 0x11f   : > { %v475_v34 = vsel %vm328_vm0, %v650_v33, 0.0  ;;  %v434_v49 = vmul.f32 1.442695, %v650_v33 }
 0x120   : > { %476 = vadd.xlane.f32.xlu1 %v475_v34 }
 0x123   : > { %v422_v35 = vpop.f32.mrf.mxu2 }
 0x124   : > { %v423_v36 = vadd.f32 %v646_v27, %v422_v35 }
 0x126   : > { %651 = vtanh.f32 %v423_v36 }
 0x12b   : > { %v425_v38 = vpop.f32.mrf.mxu2 }
 0x12c   : > { %v652_v37 = vpop.eup %651  ;;  %v426_v39 = vadd.f32 %v646_v27, %v425_v38 }
 0x12d   : > { %452 = vrot.lane.b32.xlu2 %v652_v37, %s671_s10  ;;  %v478_v43 = vsel %vm328_vm0, %v652_v37, 0.0  ;;  %v436_v50 = vmul.f32 1.442695, %v652_v37 }
 0x12e   : > { %653 = vtanh.f32 %v426_v39 }
 0x12f   : > { %655 = vpow2.f32 %v432_v44 }
 0x130   : > { %657 = vpow2.f32 %v434_v49 }
 0x131   : > { %659 = vpow2.f32 %v436_v50 }
 0x134   : > { %v654_v41 = vpop.eup %653 }
 0x135   : > { %v481_v42 = vsel %vm328_vm0, %v654_v41, 0.0  ;;  %v656_v45 = vpop.eup %655  ;;  %v438_v1 = vmul.f32 1.442695, %v654_v41 }
 0x136   : > { %v440_v46 = vmul.f32 %v656_v45, %v741_v5  ;;  %v658_v52 = vpop.eup %657 }
 0x137   : > { %v660_v53 = vpop.eup %659  ;;  %v441_v55 = vmul.f32 %v658_v52, %v743_v6  ;;  %661 = vpow2.f32 %v438_v1 }
 0x138   : > { %v442_v56 = vmul.f32 %v660_v53, %v755_v9 }
 0x139   : > { %450 = vrot.lane.b32.xlu1 %v650_v33, %s671_s10 }
 0x13d   : > { %v662_v8 = vpop.eup %661 }
 0x13e   : > { %v443_v9 = vmul.f32 %v662_v8, %v759_v10 }
 0x146   : > { %473 = vadd.xlane.f32.xlu0 %v472_v40 }
 0x14e   : > { %482 = vadd.xlane.f32.xlu0 %v481_v42 }
 0x156   : > { %479 = vadd.xlane.f32.xlu2 %v478_v43 }
 0x16e   : > { %454 = vrot.lane.b32.xlu2 %v654_v41, %s671_s10 }
 0x187   : > { %v453_v54 = vpop.permute.xlu2 %452 }
 0x188   : > { %v462_v59 = vadd.f32 %v453_v54, %v442_v56 }
 0x18a   : > { %466 = vst.msk [vmem:[%s787_s14 + $0x10] sm:$0xff] %vm328_vm0, %v462_v59 }
 0x18e   : > { %v449_v47 = vpop.permute.xlu0 %448 }
 0x18f   : > { %v460_v48 = vadd.f32 %v449_v47, %v440_v46 }
 0x191   : > { %464 = vst.msk [vmem:[%s787_s14] sm:$0xff] %vm328_vm0, %v460_v48 }
 0x193   : > { %v477_v51 = vpop.xlane.xlu1 %476 }
 0x194   : > { %v485_v0 = vadd.f32 %v477_v51, %v469_v61 }
 0x196   : > { %490 = vst.msk [vmem:[%s316_s20 + $0x8] sm:$0xff] %vm488_vm2, %v485_v0 }
 0x1ab   : > { %v451_v57 = vpop.permute.xlu1 %450 }
 0x1ac   : > { %v461_v58 = vadd.f32 %v451_v57, %v441_v55 }
 0x1ae   : > { %465 = vst.msk [vmem:[%s787_s14 + $0x8] sm:$0xff] %vm328_vm0, %v461_v58 }
 0x1b9   : > { %v474_v62 = vpop.xlane.xlu0 %473 }
 0x1ba   : > { %v484_v63 = vadd.f32 %v474_v62, %v468_v60 }
 0x1bc   : > { %489 = vst.msk [vmem:[%s316_s20] sm:$0xff] %vm488_vm2, %v484_v63 }
 0x1c1   : > { %v483_v3 = vpop.xlane.xlu0 %482 }
 0x1c2   : > { %v487_v6 = vadd.f32 %v483_v3, %v471_v2 }
 0x1c4   : > { %492 = vst.msk [vmem:[%s316_s20 + $0x18] sm:$0xff] %vm488_vm2, %v487_v6 }
 0x1c9   : > { %v480_v5 = vpop.xlane.xlu2 %479 }
 0x1ca   : > { %v486_v7 = vadd.f32 %v480_v5, %v470_v4 }
 0x1cc   : > { %491 = vst.msk [vmem:[%s316_s20 + $0x10] sm:$0xff] %vm488_vm2, %v486_v7 }
 0x1d1   : > { %v455_v11 = vpop.permute.xlu2 %454 }
 0x1d2   : > { %v463_v12 = vadd.f32 %v455_v11, %v443_v9 }
 0x1d4   : > { %467 = vst.msk [vmem:[%s787_s14 + $0x18] sm:$0xff] %vm328_vm0, %v463_v12 }
 0x1d5 PF: > { %s18_s24 = sadd.s32 1, %s669_s24  }
 0x1d6   : > { %p15_p4 = scmp.ge.s32.totalorder %s18_s24, 4  }
 0x1d8   :  { %17 = sbr.rel (!%p15_p4) target bundleno = 1 (0x1), region = 89 }

</bundles_post_ra>
